<compile_context>
chip_gen: v7x
topology: tpu7x:2x2x1
jax: 0.10.0
libtpu: 0.0.40
codegen_flags: <defaults>
</compile_context>

<pallas_src>
import jax
import jax.numpy as jnp
from jax.experimental import pallas as pl
from jax.experimental.pallas import tpu as pltpu


def _bn_ac_conv_kernel(scale_ref, shift_ref, w_ref, x_ref, o_ref):
    # scale_ref/shift_ref: (C_in, 1)    folded eval-mode BN affine (per in-channel)
    # w_ref:               (C_out, C_in) 1x1x1 conv weight
    # x_ref:               (C_in, tile_m) tile of one batch element's activations
    # o_ref:               (C_out, tile_m)
    h = jnp.maximum(x_ref[...] * scale_ref[...] + shift_ref[...], 0.0)
    o_ref[...] = jnp.dot(
        w_ref[...], h, preferred_element_type=jnp.float32
    ).astype(o_ref.dtype)


def bn_ac_conv3d(x, gamma, beta, running_mean, running_var, conv_w, *, eps=1e-5,
                 tile_m=1024):
    """x: (N, C_in, D, H, W), conv_w: (C_out, C_in, 1, 1, 1) -> (N, C_out, D, H, W)."""
    N, C_in, D, H, W = x.shape
    C_out = conv_w.shape[0]
    M = D * H * W

    # Pick a lane-dense tile: full extent if it fits, else a large multiple of 128.
    if M <= tile_m:
        tile_m = M
    else:
        tile_m = max(128, (tile_m // 128) * 128)
    m_tiles = pl.cdiv(M, tile_m)  # partial last tile is fine: columns independent,
                                  # out-of-bounds output columns are masked writes.

    # Fold eval-mode BatchNorm into a per-channel scale/shift.
    inv_std = jax.lax.rsqrt(running_var + eps)
    scale = (gamma * inv_std).reshape(C_in, 1).astype(jnp.float32)
    shift = (beta - running_mean * gamma * inv_std).reshape(C_in, 1).astype(jnp.float32)

    # Native layout: (N, C_in, D, H, W) -> (N, C_in, M) is a free reshape (no copy).
    x3d = x.reshape(N, C_in, M).astype(jnp.float32)
    w2d = conv_w.reshape(C_out, C_in).astype(jnp.float32)

    out3d = pl.pallas_call(
        _bn_ac_conv_kernel,
        out_shape=jax.ShapeDtypeStruct((N, C_out, M), jnp.float32),
        grid_spec=pltpu.PrefetchScalarGridSpec(
            num_scalar_prefetch=0,
            grid=(N, m_tiles),
            in_specs=[
                # scale / shift / weight: constant block index -> one DMA total,
                # VMEM-resident across all grid steps.
                pl.BlockSpec((C_in, 1), lambda n, j: (0, 0)),
                pl.BlockSpec((C_in, 1), lambda n, j: (0, 0)),
                pl.BlockSpec((C_out, C_in), lambda n, j: (0, 0)),
                # activations: squeeze the batch dim, tile the flattened spatial dim.
                pl.BlockSpec((pl.Squeezed(), C_in, tile_m), lambda n, j: (n, 0, j)),
            ],
            out_specs=pl.BlockSpec(
                (pl.Squeezed(), C_out, tile_m), lambda n, j: (n, 0, j)
            ),
        ),
        compiler_params=pltpu.CompilerParams(
            dimension_semantics=("parallel", "parallel"),
        ),
    )(scale, shift, w2d, x3d)

    # (N, C_out, M) -> (N, C_out, D, H, W): free reshape, no transpose.
    return out3d.reshape(N, C_out, D, H, W)


def _reference(x, gamma, beta, running_mean, running_var, conv_w, eps=1e-5):
    # Pure-JAX reference of eval-mode BN -> ReLU -> 1x1x1 conv.
    xb = (x - running_mean[None, :, None, None, None]) * jax.lax.rsqrt(
        running_var + eps
    )[None, :, None, None, None]
    xb = xb * gamma[None, :, None, None, None] + beta[None, :, None, None, None]
    h = jnp.maximum(xb, 0.0)
    w2d = conv_w.reshape(conv_w.shape[0], conv_w.shape[1])
    return jnp.einsum("oc,ncdhw->nodhw", w2d, h)


if __name__ == "__main__":
    key = jax.random.PRNGKey(0)
    k_x, k_g, k_b, k_m, k_v, k_w = jax.random.split(key, 6)

    N, C_in, D, H, W = 2, 16, 8, 16, 16     # M = D*H*W = 2048 -> 2 tiles of 1024
    C_out = 32

    x = jax.random.normal(k_x, (N, C_in, D, H, W), dtype=jnp.float32)
    gamma = 1.0 + 0.1 * jax.random.normal(k_g, (C_in,), dtype=jnp.float32)
    beta = 0.1 * jax.random.normal(k_b, (C_in,), dtype=jnp.float32)
    running_mean = 0.1 * jax.random.normal(k_m, (C_in,), dtype=jnp.float32)
    running_var = jnp.abs(jax.random.normal(k_v, (C_in,), dtype=jnp.float32)) + 0.5
    conv_w = 0.1 * jax.random.normal(k_w, (C_out, C_in, 1, 1, 1), dtype=jnp.float32)

    out = bn_ac_conv3d(x, gamma, beta, running_mean, running_var, conv_w)
    out = jax.block_until_ready(out)

    ref = _reference(x, gamma, beta, running_mean, running_var, conv_w)
    assert out.shape == (N, C_out, D, H, W)
    assert jnp.allclose(out, ref, atol=1e-4, rtol=1e-4)

    print("KERNEL_OK")
</pallas_src>

<mosaic_0001>
module attributes {stable_mosaic.version = 11 : i64} {
  func.func @_bn_ac_conv_kernel(%arg0: i32, %arg1: i32, %arg2: memref<16x1xf32, #tpu.memory_space<vmem>>, %arg3: memref<16x1xf32, #tpu.memory_space<vmem>>, %arg4: memref<32x16xf32, #tpu.memory_space<vmem>>, %arg5: memref<1x16x1024xf32, #tpu.memory_space<vmem>>, %arg6: memref<1x32x1024xf32, #tpu.memory_space<vmem>>) attributes {dimension_semantics = [#tpu.dimension_semantics<parallel>, #tpu.dimension_semantics<parallel>], iteration_bounds = array<i64: 2, 2>, scalar_prefetch = 0 : i64, scratch_operands = 0 : i64, tpu.core_type = #tpu.core_type<tc>, window_params = [{pipeline_mode = #tpu.pipeline_mode<synchronous>, transform_indices = @transform_0, window_bounds = array<i64: 16, 1>}, {pipeline_mode = #tpu.pipeline_mode<synchronous>, transform_indices = @transform_1, window_bounds = array<i64: 16, 1>}, {pipeline_mode = #tpu.pipeline_mode<synchronous>, transform_indices = @transform_2, window_bounds = array<i64: 32, 16>}, {transform_indices = @transform_3, window_bounds = array<i64: 1, 16, 1024>}, {transform_indices = @transform_4, window_bounds = array<i64: 1, 32, 1024>}]} {
    %c0 = arith.constant 0 : index
    %c0_0 = arith.constant 0 : index
    %c0_1 = arith.constant 0 : index
    %0 = vector.load %arg5[%c0, %c0_0, %c0_1] : memref<1x16x1024xf32, #tpu.memory_space<vmem>>, vector<1x16x1024xf32>
    %1 = vector.shape_cast %0 : vector<1x16x1024xf32> to vector<16x1024xf32>
    %c0_2 = arith.constant 0 : index
    %c0_3 = arith.constant 0 : index
    %2 = vector.load %arg2[%c0_2, %c0_3] : memref<16x1xf32, #tpu.memory_space<vmem>>, vector<16x1xf32>
    %3 = vector.broadcast %2 : vector<16x1xf32> to vector<16x1024xf32>
    %4 = arith.mulf %1, %3 : vector<16x1024xf32>
    %c0_4 = arith.constant 0 : index
    %c0_5 = arith.constant 0 : index
    %5 = vector.load %arg3[%c0_4, %c0_5] : memref<16x1xf32, #tpu.memory_space<vmem>>, vector<16x1xf32>
    %6 = vector.broadcast %5 : vector<16x1xf32> to vector<16x1024xf32>
    %7 = arith.addf %4, %6 : vector<16x1024xf32>
    %cst = arith.constant 0.000000e+00 : f32
    %8 = vector.broadcast %cst : f32 to vector<16x1024xf32>
    %9 = arith.maximumf %7, %8 : vector<16x1024xf32>
    %c0_6 = arith.constant 0 : index
    %c0_7 = arith.constant 0 : index
    %10 = vector.load %arg4[%c0_6, %c0_7] : memref<32x16xf32, #tpu.memory_space<vmem>>, vector<32x16xf32>
    %cst_8 = arith.constant dense<0.000000e+00> : vector<32x1024xf32>
    %11 = tpu.matmul %10, %9, %cst_8 {dimension_numbers = #tpu.dot_dimension_numbers<[1], [0], [0], [1], [0, 0, 1, 1], [], []>} : vector<32x16xf32>, vector<16x1024xf32>, vector<32x1024xf32> -> vector<32x1024xf32>
    %c0_9 = arith.constant 0 : index
    %c0_10 = arith.constant 0 : index
    %c0_11 = arith.constant 0 : index
    %12 = vector.load %arg6[%c0_9, %c0_10, %c0_11] : memref<1x32x1024xf32, #tpu.memory_space<vmem>>, vector<1x32x1024xf32>
    %13 = vector.shape_cast %12 : vector<1x32x1024xf32> to vector<32x1024xf32>
    %14 = vector.shape_cast %11 : vector<32x1024xf32> to vector<1x32x1024xf32>
    tpu.vector_store %arg6[%c0_9, %c0_10, %c0_11], %14 {strides = array<i32>} : memref<1x32x1024xf32, #tpu.memory_space<vmem>>, vector<1x32x1024xf32>,
    return
  }
  func.func @transform_0(%arg0: i32, %arg1: i32) -> (i32, i32) {
    %c0_i32 = arith.constant 0 : i32
    %c0_i32_0 = arith.constant 0 : i32
    %c0_i32_1 = arith.constant 0 : i32
    return %c0_i32, %c0_i32_0 : i32, i32
  }
  func.func @transform_1(%arg0: i32, %arg1: i32) -> (i32, i32) {
    %c0_i32 = arith.constant 0 : i32
    %c0_i32_0 = arith.constant 0 : i32
    %c0_i32_1 = arith.constant 0 : i32
    return %c0_i32, %c0_i32_0 : i32, i32
  }
  func.func @transform_2(%arg0: i32, %arg1: i32) -> (i32, i32) {
    %c0_i32 = arith.constant 0 : i32
    %c0_i32_0 = arith.constant 0 : i32
    %c0_i32_1 = arith.constant 0 : i32
    return %c0_i32, %c0_i32_0 : i32, i32
  }
  func.func @transform_3(%arg0: i32, %arg1: i32) -> (i32, i32, i32) {
    %c0_i32 = arith.constant 0 : i32
    %c0_i32_0 = arith.constant 0 : i32
    return %arg0, %c0_i32, %arg1 : i32, i32, i32
  }
  func.func @transform_4(%arg0: i32, %arg1: i32) -> (i32, i32, i32) {
    %c0_i32 = arith.constant 0 : i32
    %c0_i32_0 = arith.constant 0 : i32
    return %arg0, %c0_i32, %arg1 : i32, i32, i32
  }
}

</mosaic_0001>

<bundles_post_ra>
// kernel: tpu_custom_call.1
= control target key start
LH: loop header
LB: loop body
LE: loop exit
PB: predicated region body
PF: predicated region fallthrough
CT: control target
= control target key end

     0   :  { %9 = vsyncpa [#allocation3], 0  ;;  %s1444_s0 = inlined_call_operand.vmem [shape: f32[16,1], index: 0, kind: input, shape index: {}]   ;;  %s1445_s1 = inlined_call_operand.vmem [shape: f32[16,1], index: 1, kind: input, shape index: {}]   ;;  %s1446_s2 = inlined_call_operand.vmem [shape: f32[32,16], index: 2, kind: input, shape index: {}]   ;;  %s1447_s3 = inlined_call_operand.hbm [shape: f32[2,16,2048], index: 3, kind: input, shape index: {}]   ;;  %s1448_s4 = inlined_call_operand.hbm [shape: f32[2,32,2048], index: 4, kind: output, shape index: {}]  }
   0x1   :  { %11 = vsyncpa [#allocation3 + $0x1], 0 }
   0x2   :  { %12 = vsyncpa [#allocation4], 0 }
   0x3   :  { %14 = vsyncpa [#allocation4 + $0x1], 0  ;;  %s1137_s15 = smov 0   ;;  %s1139_s16 = smov 0  }
   0x4   :  { %s1141_s17 = smov 0   ;;  %s1143_s18 = smov 0  }
   0x5   :  { %s1145_s19 = smov 0   ;;  %s1147_s20 = smov 0  }
   0x6   :  { %s1149_s21 = smov 0   ;;  %s1151_s22 = smov 0  }
   0x7 LB: > { %s835_s23 = sadd.s32 4294967295, %s1100_s22   ;;  %s836_s24 = sadd.s32 4294967294, %s1100_s22   ;;  %s1100_s22 = sphi %s1151_s22, %s20_s22   ;;  %s1096_s21 = sphi %s1149_s21, %s1467_s21   ;;  %s1092_s20 = sphi %s1147_s20, %s1466_s20   ;;  %s1088_s19 = sphi %s1145_s19, %s1465_s19   ;;  %s1084_s18 = sphi %s1143_s18, %s1464_s18   ;;  %s1080_s17 = sphi %s1141_s17, %s1463_s17   ;;  %s1076_s16 = sphi %s1139_s16, %s1462_s16   ;;  %s1072_s15 = sphi %s1137_s15, %s1461_s15  }
   0x8   : > { %s29_s25 = sadd.s32 1, %s1092_s20  ;;  %s32_s26 = sadd.s32 1, %s1096_s21 }
   0x9   : > { %p30_p0 = scmp.ge.s32.totalorder %s29_s25, 2  ;;  %s104_s27 = sadd.s32 1, %s1080_s17 }
   0xa   : > { %p111_p1 = scmp.ne.s32.totalorder %s1080_s17, %s1076_s16  ;;  %p112_p2 = scmp.eq.s32.totalorder %s1100_s22, 0 }
   0xb   : > { %s1469_s25 = smov (%p30_p0, %s29_s25), 0  ;;  %s1471_s26 = smov (!%p30_p0, %s32_s26), %s1096_s21 }
   0xc   : > { %1451 = sst [smem:[#allocation8_spill]] %s1469_s25  ;;  %s100_s28 = ssub.s32 %s1092_s20, %s1469_s25 }
   0xd   : > { %p1190_p3 = por %p112_p2, %p111_p1  ;;  %p34_p4 = scmp.ge.s32.totalorder %s1471_s26, 2 }
   0xe   : > { %p117_p5 = scmp.ne.s32.totalorder %s1076_s16, %s1072_s15  ;;  %p118_p6 = scmp.eq.s32.totalorder %s835_s23, 0 }
   0xf   : > { %p143_p7 = scmp.eq.s32.totalorder %s835_s23, 3  ;;  %s1473_s26 = smov (%p34_p4, %s1471_s26), 0 }
  0x10   : > { %p1198_p8 = por %p118_p6, %p117_p5  ;;  %s99_s6 = ssub.s32 %s1096_s21, %s1473_s26 }
  0x11   : > { %p1202_p9 = por %p143_p7, %p111_p1  ;;  %p149_p10 = scmp.eq.s32.totalorder %s836_s24, 3 }
  0x12   : > { %s101_s7 = sor.u32 %s100_s28, %s99_s6  ;;  %p896_p13 = scmp.lt.s32.totalorder %s1100_s22, 4 }
  0x13   : > { %s1454_s5 = scalar_select %p1202_p9, 1, 0 }
  0x14   : > { %p102_p11 = scmp.eq.s32.totalorder %s101_s7, 0  ;;  %p1208_p12 = por %p149_p10, %p117_p5 }
  0x15   : > { %s178_s9 = sand.u32 1, %s1080_s17   ;;  %s840_s12 = sshll.u32 %s1092_s20, 3 }
  0x16   : > { %s1455_s8 = scalar_select %p1208_p12, 1, 0 }
  0x17   : > { %s1215_s10 = scalar_select %p102_p11, %s1080_s17, %s104_s27  }
  0x18   : > { %s839_s11 = sshll.u32 %s178_s9, 7  ;;  %s841_s13 = sshll.u32 %s1096_s21, 5 }
  0x19   : > { %s182_s14 = scalar_lea.vmem [#allocation2], %s839_s11  ;;  %s188_s25 = sadd.s32 %s841_s13, %s840_s12 }
  0x1a   : > { %s191_s23 = sshll.u32 %s182_s14, 4  ;;  %s842_s24 = sshll.u32 %s188_s25, 7  ;;  %s1219_s23 = int_to_ptr.vmem [resolvable:$true] %s191_s23 }
  0x1b   : > { %p1223_p0 = pnand %p896_p13, %p1190_p3  ;;  %s1230_s27 = scalar_lea.hbm %s1447_s3, %s842_s24 }
  0x1c   : > { %s1233_s11 = scalar_lea.sflag [#allocation3], %s178_s9  ;;  %s972_s25 = scalar_lea.hbm %s1230_s27, 2048 }
  0x1d   : > { %p973_p2 = scmp.ne.s32.totalorder %s1230_s27, %s972_s25  ;;  %p974_p3 = pneg %p1223_p0 }
  0x1e   : > { %s977_s13 = scalar_lea.hbm %s1447_s3, 8192  ;;  %p978_p6 = scmp.lt.u32.totalorder %s1230_s27, %s1447_s3 }
  0x1f   : > { %p975_p4 = pnand %p974_p3, %p973_p2  ;;  %p979_p7 = scmp.lt.u32.totalorder %s977_s13, %s972_s25 }
  0x20   : > { %p981_p11 = scmp.lt.u32.totalorder %s972_s25, %s1230_s27 }
  0x21   : > { %p976_p5 = pneg %p975_p4  ;;  %p980_p10 = por %p979_p7, %p978_p6 }
  0x23   : > { %p982_p13 = por %p981_p11, %p980_p10 }
  0x25   : > { %p983_p1 = pnand %p982_p13, %p976_p5 }
  0x27   : > { %986 = shalt.err (!%p983_p1)
}
  0x28   : > { %s987_s9 = scalar_lea.vmem %s1219_s23, 2048  ;;  %s1102_s6 = smov [#allocation2]  }
  0x29   : > { %p988_p2 = scmp.ne.s32.totalorder %s1219_s23, %s987_s9  ;;  %s992_s7 = sshll.u32 %s1102_s6, 4  ;;  %s993_s7 = int_to_ptr.vmem [resolvable:$false] %s992_s7 }
  0x2a   : > { %s994_s29 = scalar_lea.vmem %s993_s7, 4096  ;;  %p995_p9 = scmp.lt.s32.totalorder %s1219_s23, %s993_s7 }
  0x2b   : > { %p990_p4 = pnand %p988_p2, %p974_p3  ;;  %p996_p6 = scmp.lt.s32.totalorder %s994_s29, %s987_s9 }
  0x2d   : > { %p991_p12 = pneg %p990_p4  ;;  %p997_p7 = por %p996_p6, %p995_p9 }
  0x2f   : > { %p998_p10 = pnand %p997_p7, %p991_p12 }
  0x31   : > { %1001 = shalt.err (!%p998_p10)
}
  0x32   : > { %s1103_s25 = smov 2048   ;;  %s1104_s12 = smov 1024  }
  0x33   : > { %s1105_s13 = smov 64   ;;  %p199_p1 = scmp.lt.s32.totalorder %s1100_s22, 5 }
  0x34   : > { %891 = dma.hbm_to_vmem [thread:$0]  (!%p1223_p0), %s1230_s27, 2048, %s1219_s23, %s1233_s11, %s1103_s25, %s1104_s12, %s1105_s13  }
  0x35   : > { %p1457_p3 = scmp.ge.s32.totalorder %s1100_s22, 1 }
  0x37   : > { %p200_p5 = pnand %p1457_p3, %p199_p1 }
  0x38   : > { %s1265_s14 = sand.u32 (!%p200_p5), 1, %s1076_s16  }
  0x39   : > { %203 = sbr.rel (%p200_p5) target bundleno = 468 (0x1d4), region = 36  ;;  %s844_s24 = sshll.u32 (!%p200_p5), %s1265_s14, 7 }
  0x3a   : > { %s206_s9 = scalar_lea.sflag (!%p200_p5), [#allocation3], %s1265_s14  ;;  %s1269_s6 = scalar_lea.vmem (!%p200_p5), [#allocation2], %s844_s24 }
  0x40   : > { %1063 = dma.done.wait (%p1198_p8), %s206_s9, 2048  }
  0x41   : > { %1065 = vsyncadd (%p1198_p8), %s206_s9, 4294965248  ;;  %v1106_v0 = vmov 0   ;;  %v280_v1 = vld [vmem:[%s1445_s1] sm:$0xff]  ;;  %v281_v3 = vld [vmem:[%s1445_s1 + $0x8] sm:$0xff]  ;;  %v1107_v5 = vmov 0.0   ;;  %vm328_vm0 = vcmask 130048  }
  0x42   : > { %971 = vset.pattern.permute.xlu1 %v1106_v0  ;;  %970 = vset.pattern.permute.xlu0 %v1106_v0  ;;  %v252_v2 = vld [vmem:[%s1444_s0] sm:$0xff]  ;;  %v253_v4 = vld [vmem:[%s1444_s0 + $0x8] sm:$0xff]  ;;  %v239_v7 = vld [vmem:[%s1269_s6 + $0x18] sm:$0xff]  ;;  %s845_s11 = sshll.u32 %s1265_s14, 8  ;;  %s863_s7 = sshll.u32 %s1084_s18, 3 }
  0x43   : > { %284 = vperm.xlu1 %971, %v280_v1   ;;  %256 = vperm.xlu0 %970, %v252_v2   ;;  %v237_v6 = vld [vmem:[%s1269_s6 + $0x8] sm:$0xff]  ;;  %v236_v8 = vld [vmem:[%s1269_s6] sm:$0xff]  ;;  %v238_v9 = vld [vmem:[%s1269_s6 + $0x10] sm:$0xff]  ;;  %s1348_s30 = scalar_lea.vmem [#allocation5], %s845_s11  ;;  %s864_s29 = sshll.u32 %s1088_s19, 6 }
  0x44   : > { %405 = vmatprep.mubr.f32.mxu0 %v1107_v5  ;;  %494 = vmatprep.mubr.f32.mxu1 %v1107_v5  ;;  %v241_v10 = vld [vmem:[%s1269_s6 + $0x28] sm:$0xff]  ;;  %v243_v11 = vld [vmem:[%s1269_s6 + $0x38] sm:$0xff]  ;;  %v240_v12 = vld [vmem:[%s1269_s6 + $0x20] sm:$0xff]  ;;  %s742_s25 = sadd.s32 %s864_s29, %s863_s7  ;;  %s745_s12 = sshll.u32 %s1348_s30, 4  ;;  %s1381_s12 = int_to_ptr.vmem [resolvable:$true] %s745_s12 }
  0x45   : > { %v242_v13 = vld [vmem:[%s1269_s6 + $0x30] sm:$0xff]  ;;  %v245_v20 = vld [vmem:[%s1269_s6 + $0x48] sm:$0xff]  ;;  %v247_v21 = vld [vmem:[%s1269_s6 + $0x58] sm:$0xff]  ;;  %s865_s18 = sshll.u32 %s742_s25, 7  ;;  %s730_s9 = scalar_lea.sflag [#allocation4], %s1265_s14 }
  0x46   : > { %v244_v28 = vld [vmem:[%s1269_s6 + $0x40] sm:$0xff]  ;;  %v246_v30 = vld [vmem:[%s1269_s6 + $0x50] sm:$0xff]  ;;  %v249_v33 = vld [vmem:[%s1269_s6 + $0x68] sm:$0xff]  ;;  %s1386_s24 = scalar_lea.hbm %s1448_s4, %s865_s18  ;;  %p1458_p9 = scmp.ne.s32.totalorder %s1454_s5, 0 }
  0x47   : > { %289 = vperm.xlu1 %971, %v281_v3   ;;  %261 = vperm.xlu0 %970, %v253_v4   ;;  %v251_v40 = vld [vmem:[%s1269_s6 + $0x78] sm:$0xff]  ;;  %v248_v47 = vld [vmem:[%s1269_s6 + $0x60] sm:$0xff]  ;;  %v250_v60 = vld [vmem:[%s1269_s6 + $0x70] sm:$0xff]  ;;  %s1002_s6 = scalar_lea.vmem %s1381_s12, 4096  ;;  %s1108_s23 = smov [#allocation5]  }
  0x48   : > { %p1003_p8 = scmp.ne.s32.totalorder %s1381_s12, %s1002_s6  ;;  %s1006_s28 = sshll.u32 %s1108_s23, 4  ;;  %s1007_s28 = int_to_ptr.vmem [resolvable:$false] %s1006_s28 }
  0x49   : > { %s1008_s27 = scalar_lea.vmem %s1007_s28, 8192  ;;  %p1009_p11 = scmp.lt.s32.totalorder %s1381_s12, %s1007_s28 }
  0x4a   : > { %p1004_p12 = pnand %p1003_p8, %p1458_p9  ;;  %p1010_p13 = scmp.lt.s32.totalorder %s1008_s27, %s1002_s6 }
  0x4c   : > { %p1005_p0 = pneg %p1004_p12  ;;  %p1011_p2 = por %p1010_p13, %p1009_p11 }
  0x4e   : > { %p1012_p4 = pnand %p1011_p2, %p1005_p0 }
  0xc2   : > { %v285_v14 = vpop.permute.xlu1 %284  ;;  %v257_v15 = vpop.permute.xlu0 %256 }
  0xc3   : > { %v265_v16 = vmul.f32 %v257_v15, %v237_v6  ;;  %v267_v17 = vmul.f32 %v257_v15, %v239_v7  ;;  %v264_v18 = vmul.f32 %v257_v15, %v236_v8  ;;  %v266_v19 = vmul.f32 %v257_v15, %v238_v9 }
  0xc4   : > { %v269_v22 = vmul.f32 %v257_v15, %v241_v10  ;;  %v271_v23 = vmul.f32 %v257_v15, %v243_v11  ;;  %v268_v24 = vmul.f32 %v257_v15, %v240_v12  ;;  %v270_v25 = vmul.f32 %v257_v15, %v242_v13  ;;  %v324_v13 = vld [vmem:[%s1446_s2] sm:$0xff] }
  0xc5   : > { %v293_v26 = vadd.f32 %v285_v14, %v265_v16  ;;  %v295_v27 = vadd.f32 %v285_v14, %v267_v17  ;;  %v292_v29 = vadd.f32 %v285_v14, %v264_v18  ;;  %v294_v31 = vadd.f32 %v285_v14, %v266_v19 }
  0xc6   : > { %v262_v32 = vpop.permute.xlu0 %261  ;;  %v297_v34 = vadd.f32 %v285_v14, %v269_v22  ;;  %v299_v35 = vadd.f32 %v285_v14, %v271_v23  ;;  %v296_v36 = vadd.f32 %v285_v14, %v268_v24  ;;  %v298_v41 = vadd.f32 %v285_v14, %v270_v25  ;;  %v290_v42 = vpop.permute.xlu1 %289  ;;  %v327_v22 = vld [vmem:[%s1446_s2 + $0x18] sm:$0xff] }
  0xc7   : > { %v273_v37 = vmul.f32 %v262_v32, %v245_v20  ;;  %v309_v38 = vmax.f32 %v293_v26, 0.0  ;;  %v275_v39 = vmul.f32 %v262_v32, %v247_v21  ;;  %v311_v43 = vmax.f32 %v295_v27, 0.0  ;;  %v325_v20 = vld [vmem:[%s1446_s2 + $0x8] sm:$0xff]  ;;  %v326_v21 = vld [vmem:[%s1446_s2 + $0x10] sm:$0xff] }
  0xc8   : > { %v272_v44 = vmul.f32 %v262_v32, %v244_v28  ;;  %v308_v45 = vmax.f32 %v292_v29, 0.0  ;;  %v274_v46 = vmul.f32 %v262_v32, %v246_v30  ;;  %v310_v50 = vmax.f32 %v294_v31, 0.0 }
  0xc9   : > { %v301_v48 = vadd.f32 %v290_v42, %v273_v37  ;;  %v303_v49 = vadd.f32 %v290_v42, %v275_v39  ;;  %v277_v51 = vmul.f32 %v262_v32, %v249_v33  ;;  %v313_v54 = vmax.f32 %v297_v34, 0.0 }
  0xca   : > { %v300_v52 = vadd.f32 %v290_v42, %v272_v44  ;;  %v302_v53 = vadd.f32 %v290_v42, %v274_v46  ;;  %v279_v55 = vmul.f32 %v262_v32, %v251_v40  ;;  %v276_v59 = vmul.f32 %v262_v32, %v248_v47 }
  0xcb   : > { %v317_v56 = vmax.f32 %v301_v48, 0.0  ;;  %v319_v57 = vmax.f32 %v303_v49, 0.0  ;;  %v305_v58 = vadd.f32 %v290_v42, %v277_v51  ;;  %v315_v0 = vmax.f32 %v299_v35, 0.0 }
  0xcc   : > { %v316_v61 = vmax.f32 %v300_v52, 0.0  ;;  %v318_v62 = vmax.f32 %v302_v53, 0.0  ;;  %v307_v63 = vadd.f32 %v290_v42, %v279_v55  ;;  %v304_v4 = vadd.f32 %v290_v42, %v276_v59 }
  0xcd   : > { %v868_v1 = vpack.c.bf16 %v317_v56, %v309_v38  ;;  %v872_v2 = vpack.c.bf16 %v319_v57, %v311_v43  ;;  %v321_v3 = vmax.f32 %v305_v58, 0.0  ;;  %v278_v9 = vmul.f32 %v262_v32, %v250_v60 }
  0xce   : > { %v870_v6 = vpack.c.bf16 %v316_v61, %v308_v45  ;;  %v874_v7 = vpack.c.bf16 %v318_v62, %v310_v50  ;;  %v323_v8 = vmax.f32 %v307_v63, 0.0  ;;  %v320_v11 = vmax.f32 %v304_v4, 0.0 }
  0xcf   : > { %869 = vmatprep.subr.bf16.mxu0 %v868_v1  ;;  %873 = vmatprep.subr.bf16.mxu1 %v872_v2  ;;  %v876_v10 = vpack.c.bf16 %v321_v3, %v313_v54  ;;  %v312_v14 = vmax.f32 %v296_v36, 0.0  ;;  %v306_v15 = vadd.f32 %v290_v42, %v278_v9  ;;  %v314_v17 = vmax.f32 %v298_v41, 0.0 }
  0xd0   : > { %871 = vmatpush1.bf16.msra.mxu0 %v870_v6  ;;  %875 = vmatpush1.bf16.msra.mxu1 %v874_v7  ;;  %v880_v12 = vpack.c.bf16 %v323_v8, %v315_v0 }
  0xd1   : > { %877 = vmatprep.subr.bf16.mxu0 %v876_v10  ;;  %v878_v16 = vpack.c.bf16 %v320_v11, %v312_v14  ;;  %v322_v18 = vmax.f32 %v306_v15, 0.0 }
  0xd2   : > { %881 = vmatprep.subr.bf16.mxu1 %v880_v12 }
  0xd3   : > { %846 = vmatmul.mubr.msk.f32.vlgmr.msra.gmra.mrb[0].mxu0 %vm328_vm0, %v324_v13  ;;  %850 = vmatmul.mubr.msk.f32.vlgmr.msra.gmra.mrb[0].mxu1 %vm328_vm0, %v324_v13  ;;  %v882_v19 = vpack.c.bf16 %v322_v18, %v314_v17 }
  0xd4   : > { %879 = vmatpush1.bf16.msra.mxu0 %v878_v16  ;;  %411 = vmatprep.mubr.f32.mxu0 %v1107_v5 }
  0xd5   : > { %500 = vmatprep.mubr.f32.mxu1 %v1107_v5  ;;  %883 = vmatpush1.bf16.msra.mxu1 %v882_v19 }
  0xd7   : > { %847 = vmatmul.mubr.msk.f32.gmra.mrb[2].mxu0 %vm328_vm0, %v325_v20  ;;  %851 = vmatmul.mubr.msk.f32.gmra.mrb[2].mxu1 %vm328_vm0, %v325_v20 }
  0xd8   : > { %417 = vmatprep.mubr.f32.mxu0 %v1107_v5  ;;  %506 = vmatprep.mubr.f32.mxu1 %v1107_v5 }
  0xdb   : > { %848 = vmatmul.mubr.msk.f32.gmra.mrb[4].mxu0 %vm328_vm0, %v326_v21  ;;  %852 = vmatmul.mubr.msk.f32.gmra.mrb[4].mxu1 %vm328_vm0, %v326_v21 }
  0xdc   : > { %423 = vmatprep.mubr.f32.mxu0 %v1107_v5  ;;  %512 = vmatprep.mubr.f32.mxu1 %v1107_v5 }
  0xdf   : > { %849 = vmatmul.mubr.msk.f32.gmra.mrb[6].mxu0 %vm328_vm0, %v327_v22  ;;  %853 = vmatmul.mubr.msk.f32.gmra.mrb[6].mxu1 %vm328_vm0, %v327_v22 }
  0xe0   : > { %583 = vmatprep.mubr.f32.mxu0 %v1107_v5  ;;  %672 = vmatprep.mubr.f32.mxu1 %v1107_v5 }
  0xe3   : > { %854 = vmatmul.mubr.msk.f32.vlgmr.msra.gmra.mrb[8].mxu0 %vm328_vm0, %v324_v13  ;;  %858 = vmatmul.mubr.msk.f32.vlgmr.msra.gmra.mrb[8].mxu1 %vm328_vm0, %v324_v13 }
  0xe4   : > { %589 = vmatprep.mubr.f32.mxu0 %v1107_v5  ;;  %678 = vmatprep.mubr.f32.mxu1 %v1107_v5 }
  0xe7   : > { %855 = vmatmul.mubr.msk.f32.gmra.mrb[10].mxu0 %vm328_vm0, %v325_v20  ;;  %859 = vmatmul.mubr.msk.f32.gmra.mrb[10].mxu1 %vm328_vm0, %v325_v20 }
  0xe8   : > { %595 = vmatprep.mubr.f32.mxu0 %v1107_v5  ;;  %684 = vmatprep.mubr.f32.mxu1 %v1107_v5 }
  0xeb   : > { %856 = vmatmul.mubr.msk.f32.gmra.mrb[12].mxu0 %vm328_vm0, %v326_v21  ;;  %860 = vmatmul.mubr.msk.f32.gmra.mrb[12].mxu1 %vm328_vm0, %v326_v21 }
  0xec   : > { %601 = vmatprep.mubr.f32.mxu0 %v1107_v5  ;;  %690 = vmatprep.mubr.f32.mxu1 %v1107_v5 }
  0xef   : > { %857 = vmatmul.mubr.msk.f32.gmra.mrb[14].mxu0 %vm328_vm0, %v327_v22  ;;  %861 = vmatmul.mubr.msk.f32.gmra.mrb[14].mxu1 %vm328_vm0, %v327_v22 }
 0x1a6   : > { %v407_v23 = vpop.f32.mrb[0].mxu0  ;;  %v496_v24 = vpop.f32.mrb[0].mxu1 }
 0x1a7   : > { %697 = vst [vmem:[%s1348_s30] sm:$0xff] %v407_v23  ;;  %699 = vst [vmem:[%s1348_s30 + $0x10] sm:$0xff] %v496_v24  ;;  %v409_v5 = vpop.f32.mrb[1].mxu0  ;;  %v498_v25 = vpop.f32.mrb[1].mxu1 }
 0x1a8   : > { %698 = vst [vmem:[%s1348_s30 + $0x8] sm:$0xff] %v409_v5  ;;  %700 = vst [vmem:[%s1348_s30 + $0x18] sm:$0xff] %v498_v25 }
 0x1aa   : > { %v413_v26 = vpop.f32.mrb[2].mxu0  ;;  %v502_v27 = vpop.f32.mrb[2].mxu1 }
 0x1ab   : > { %705 = vst [vmem:[%s1348_s30 + $0x40] sm:$0xff] %v413_v26  ;;  %707 = vst [vmem:[%s1348_s30 + $0x50] sm:$0xff] %v502_v27  ;;  %v415_v28 = vpop.f32.mrb[3].mxu0  ;;  %v504_v29 = vpop.f32.mrb[3].mxu1 }
 0x1ac   : > { %706 = vst [vmem:[%s1348_s30 + $0x48] sm:$0xff] %v415_v28  ;;  %708 = vst [vmem:[%s1348_s30 + $0x58] sm:$0xff] %v504_v29 }
 0x1ae   : > { %v419_v30 = vpop.f32.mrb[4].mxu0  ;;  %v508_v31 = vpop.f32.mrb[4].mxu1 }
 0x1af   : > { %713 = vst [vmem:[%s1348_s30 + $0x80] sm:$0xff] %v419_v30  ;;  %715 = vst [vmem:[%s1348_s30 + $0x90] sm:$0xff] %v508_v31  ;;  %v421_v32 = vpop.f32.mrb[5].mxu0  ;;  %v510_v33 = vpop.f32.mrb[5].mxu1 }
 0x1b0   : > { %714 = vst [vmem:[%s1348_s30 + $0x88] sm:$0xff] %v421_v32  ;;  %716 = vst [vmem:[%s1348_s30 + $0x98] sm:$0xff] %v510_v33 }
 0x1b2   : > { %v425_v34 = vpop.f32.mrb[6].mxu0  ;;  %v514_v35 = vpop.f32.mrb[6].mxu1 }
 0x1b3   : > { %721 = vst [vmem:[%s1348_s30 + $0xc0] sm:$0xff] %v425_v34  ;;  %723 = vst [vmem:[%s1348_s30 + $0xd0] sm:$0xff] %v514_v35  ;;  %v427_v36 = vpop.f32.mrb[7].mxu0  ;;  %v516_v37 = vpop.f32.mrb[7].mxu1 }
 0x1b4   : > { %722 = vst [vmem:[%s1348_s30 + $0xc8] sm:$0xff] %v427_v36  ;;  %724 = vst [vmem:[%s1348_s30 + $0xd8] sm:$0xff] %v516_v37 }
 0x1b6   : > { %v585_v38 = vpop.f32.mrb[8].mxu0  ;;  %v674_v39 = vpop.f32.mrb[8].mxu1 }
 0x1b7   : > { %701 = vst [vmem:[%s1348_s30 + $0x20] sm:$0xff] %v585_v38  ;;  %703 = vst [vmem:[%s1348_s30 + $0x30] sm:$0xff] %v674_v39  ;;  %v587_v40 = vpop.f32.mrb[9].mxu0  ;;  %v676_v41 = vpop.f32.mrb[9].mxu1 }
 0x1b8   : > { %702 = vst [vmem:[%s1348_s30 + $0x28] sm:$0xff] %v587_v40  ;;  %704 = vst [vmem:[%s1348_s30 + $0x38] sm:$0xff] %v676_v41 }
 0x1ba   : > { %v591_v42 = vpop.f32.mrb[10].mxu0  ;;  %v680_v43 = vpop.f32.mrb[10].mxu1 }
 0x1bb   : > { %709 = vst [vmem:[%s1348_s30 + $0x60] sm:$0xff] %v591_v42  ;;  %711 = vst [vmem:[%s1348_s30 + $0x70] sm:$0xff] %v680_v43  ;;  %v593_v44 = vpop.f32.mrb[11].mxu0  ;;  %v682_v45 = vpop.f32.mrb[11].mxu1 }
 0x1bc   : > { %710 = vst [vmem:[%s1348_s30 + $0x68] sm:$0xff] %v593_v44  ;;  %712 = vst [vmem:[%s1348_s30 + $0x78] sm:$0xff] %v682_v45 }
 0x1be   : > { %v597_v46 = vpop.f32.mrb[12].mxu0  ;;  %v686_v47 = vpop.f32.mrb[12].mxu1 }
 0x1bf   : > { %717 = vst [vmem:[%s1348_s30 + $0xa0] sm:$0xff] %v597_v46  ;;  %719 = vst [vmem:[%s1348_s30 + $0xb0] sm:$0xff] %v686_v47  ;;  %v599_v48 = vpop.f32.mrb[13].mxu0  ;;  %v688_v49 = vpop.f32.mrb[13].mxu1 }
 0x1c0   : > { %718 = vst [vmem:[%s1348_s30 + $0xa8] sm:$0xff] %v599_v48  ;;  %720 = vst [vmem:[%s1348_s30 + $0xb8] sm:$0xff] %v688_v49 }
 0x1c2   : > { %v603_v50 = vpop.f32.mrb[14].mxu0  ;;  %v692_v51 = vpop.f32.mrb[14].mxu1 }
 0x1c3   : > { %725 = vst [vmem:[%s1348_s30 + $0xe0] sm:$0xff] %v603_v50  ;;  %727 = vst [vmem:[%s1348_s30 + $0xf0] sm:$0xff] %v692_v51  ;;  %v605_v52 = vpop.f32.mrb[15].mxu0  ;;  %v694_v53 = vpop.f32.mrb[15].mxu1 }
 0x1c4   : > { %726 = vst [vmem:[%s1348_s30 + $0xe8] sm:$0xff] %v605_v52  ;;  %728 = vst [vmem:[%s1348_s30 + $0xf8] sm:$0xff] %v694_v53 }
 0x1c5   : > { %1015 = shalt.err (!%p1012_p4)
}
 0x1c6   : > { %s1016_s11 = scalar_lea.hbm %s1386_s24, 4096  ;;  %s1020_s29 = scalar_lea.hbm %s1448_s4, 16384 }
 0x1c7   : > { %p1017_p6 = scmp.ne.s32.totalorder %s1386_s24, %s1016_s11  ;;  %p1021_p1 = scmp.lt.u32.totalorder %s1386_s24, %s1448_s4 }
 0x1c8   : > { %p1022_p3 = scmp.lt.u32.totalorder %s1020_s29, %s1016_s11  ;;  %p1024_p8 = scmp.lt.u32.totalorder %s1016_s11, %s1386_s24 }
 0x1c9   : > { %p1018_p7 = pnand %p1017_p6, %p1458_p9 }
 0x1ca   : > { %p1023_p5 = por %p1022_p3, %p1021_p1 }
 0x1cb   : > { %p1019_p10 = pneg %p1018_p7 }
 0x1cc   : > { %p1025_p12 = por %p1024_p8, %p1023_p5 }
 0x1ce   : > { %p1026_p0 = pnand %p1025_p12, %p1019_p10 }
 0x1d0   : > { %1029 = shalt.err (!%p1026_p0)
}
 0x1d1   : > { %s1109_s19 = smov 1024   ;;  %s1110_s13 = smov 2048  }
 0x1d2   : > { %s1111_s6 = smov 64  }
 0x1d3   : > { %886 = dma.vmem_to_hbm [thread:$0]  (%p1458_p9), %s1381_s12, 4096, %s1386_s24, %s730_s9, %s1109_s19, %s1110_s13, %s1111_s6  }
 0x1d4 PF: > { %p897_p11 = scmp.ge.s32.totalorder %s1100_s22, 2  ;;  %s760_s23 = sand.u32 1, %s1072_s15  }
 0x1d5   : > { %p1459_p13 = scmp.ne.s32.totalorder %s1455_s8, 0  ;;  %s761_s28 = scalar_lea.sflag [#allocation4], %s760_s23 }
 0x1d7   : > { %p893_p2 = pnand %p897_p11, %p1459_p13 }
 0x1d9   : > { %1067 = dma.done.wait (!%p893_p2), %s761_s28, 4096  }
 0x1da   : > { %1069 = vsyncadd (!%p893_p2), %s761_s28, 4294963200  ;;  %s20_s22 = sadd.s32 1, %s1100_s22   ;;  %s1460_s5 = sld [smem:[#allocation8_spill]] }
 0x1db   : > { %p17_p4 = scmp.ge.s32.totalorder %s20_s22, 6   ;;  %s1461_s15 = smov %s1076_s16 }
 0x1dc   : > { %s1462_s16 = smov %s1080_s17  ;;  %s1463_s17 = smov %s1215_s10 }
 0x1dd   : > { %s1464_s18 = smov %s1092_s20  ;;  %s1465_s19 = smov %s1096_s21 }
 0x1de   : > { %s1467_s21 = smov %s1473_s26  ;;  %19 = sbr.rel (!%p17_p4) target bundleno = 7 (0x7), region = 81 }
 0x1e0   : > { %s1466_s20 = smov %s1460_s5 }
 0x1e5   :  { %766 = vsyncpa [#allocation3], 1 }
 0x1e6   :  { %768 = vsyncpa [#allocation3 + $0x1], 1 }
 0x1e7   :  { %769 = vsyncpa [#allocation4], 1 }
 0x1e8   :  { %771 = vsyncpa [#allocation4 + $0x1], 1 }

</bundles_post_ra>
